<compile_context>
chip_gen: v7x
topology: tpu7x:2x2x1
jax: 0.10.0
libtpu: 0.0.40
codegen_flags: <defaults>
</compile_context>

<pallas_src>
import jax
import jax.numpy as jnp
import numpy as np
from jax.experimental import pallas as pl
from jax.experimental.pallas import tpu as pltpu  # noqa: F401  (TPU backend)

# logical dims (match the PyTorch module)
IN_DIM = 1000
H0 = 200
H1 = 80
H2 = 40
LAT = 1            # module default lat=1

# padded dims used inside the kernel (lane = 128, sublane = 8 friendly)
IN_P = 1024
H0_P = 256
H1_P = 128
H2_P = 128
HEAD_P = 128       # fused (mu | log_var) head padded to a full lane tile
SUB = 8            # batch padded to a multiple of 8 sublanes

_SELU_SCALE = 1.0507009873554805
_SELU_ALPHA = 1.6732632423543772


def _selu(x):
    # f32 elementwise; exp argument clamped <= 0 so the unselected branch
    # never overflows (jnp.where evaluates both branches).
    neg = _SELU_SCALE * _SELU_ALPHA * (jnp.exp(jnp.minimum(x, 0.0)) - 1.0)
    return jnp.where(x > 0, _SELU_SCALE * x, neg)


def _mlp_kernel(x_ref, w0_ref, b0_ref, w1_ref, b1_ref, w2_ref, b2_ref,
                wh_ref, bh_ref, out_ref):
    # Layer 0: (Bp, 1024) bf16 @ (1024, 256) bf16 -> f32, SELU in f32
    h = jnp.dot(x_ref[...], w0_ref[...], preferred_element_type=jnp.float32)
    h = _selu(h + b0_ref[...])
    # Layer 1: (Bp, 256) @ (256, 128)
    h = jnp.dot(h.astype(jnp.bfloat16), w1_ref[...],
                preferred_element_type=jnp.float32)
    h = _selu(h + b1_ref[...])
    # Layer 2: (Bp, 128) @ (128, 128)
    h = jnp.dot(h.astype(jnp.bfloat16), w2_ref[...],
                preferred_element_type=jnp.float32)
    h = _selu(h + b2_ref[...])
    # Fused (mu | log_var) head, padded to 128 lanes -> dense output store
    out_ref[...] = (jnp.dot(h.astype(jnp.bfloat16), wh_ref[...],
                            preferred_element_type=jnp.float32)
                    + bh_ref[...]).astype(out_ref.dtype)


def _pad2(a, rows, cols):
    return jnp.pad(a, ((0, rows - a.shape[0]), (0, cols - a.shape[1])))


def pack_params(params):
    """Zero-pad to kernel shapes, cast weights to bf16, fuse the two heads."""
    w0, b0, w1, b1, w2, b2, wmu, bmu, wlv, blv = params
    w0p = _pad2(w0, IN_P, H0_P).astype(jnp.bfloat16)
    b0p = _pad2(b0, 1, H0_P)                              # biases stay f32
    w1p = _pad2(w1, H0_P, H1_P).astype(jnp.bfloat16)
    b1p = _pad2(b1, 1, H1_P)
    w2p = _pad2(w2, H1_P, H2_P).astype(jnp.bfloat16)
    b2p = _pad2(b2, 1, H2_P)
    wh = jnp.concatenate([wmu, wlv], axis=1)              # (H2, 2*LAT)
    bh = jnp.concatenate([bmu, blv], axis=1)              # (1, 2*LAT)
    whp = _pad2(wh, H2_P, HEAD_P).astype(jnp.bfloat16)
    bhp = _pad2(bh, 1, HEAD_P)
    return (w0p, b0p, w1p, b1p, w2p, b2p, whp, bhp)


@jax.jit
def enc_beamform_vae_forward(x, packed):
    """x: (B, 1000) float32.  Returns (mu, log_var), each (B, LAT) float32."""
    b = x.shape[0]
    bp = ((b + SUB - 1) // SUB) * SUB
    xp = jnp.pad(x, ((0, bp - b), (0, IN_P - IN_DIM))).astype(jnp.bfloat16)

    out = pl.pallas_call(
        _mlp_kernel,
        out_shape=jax.ShapeDtypeStruct((bp, HEAD_P), jnp.float32),
    )(xp, *packed)

    mu = out[:b, 0:LAT]
    log_var = out[:b, LAT:2 * LAT]
    return mu, log_var


def init_params(key):
    """Deterministic synthetic parameters shaped like the PyTorch module.
    LeCun-normal-ish weights (std = 1/sqrt(fan_in), the canonical SELU init),
    uniform biases.  Weights stored as (in, out)."""
    ks = jax.random.split(key, 10)

    def w(k, fan_in, fan_out):
        return jax.random.normal(k, (fan_in, fan_out), jnp.float32) / jnp.sqrt(float(fan_in))

    def bias(k, fan_in, fan_out):
        bound = 1.0 / jnp.sqrt(float(fan_in))
        return jax.random.uniform(k, (1, fan_out), jnp.float32, -bound, bound)

    w0, b0 = w(ks[0], IN_DIM, H0), bias(ks[1], IN_DIM, H0)
    w1, b1 = w(ks[2], H0, H1), bias(ks[3], H0, H1)
    w2, b2 = w(ks[4], H1, H2), bias(ks[5], H1, H2)
    wmu, bmu = w(ks[6], H2, LAT), bias(ks[7], H2, LAT)
    wlv, blv = w(ks[8], H2, LAT), bias(ks[9], H2, LAT)
    return (w0, b0, w1, b1, w2, b2, wmu, bmu, wlv, blv)


def reference_forward(x, params):
    """Plain-JAX reference using the same bf16-weight / f32-accumulate recipe."""
    w0, b0, w1, b1, w2, b2, wmu, bmu, wlv, blv = params

    def lin(h, w, bb):
        return jnp.dot(h.astype(jnp.bfloat16), w.astype(jnp.bfloat16),
                       preferred_element_type=jnp.float32) + bb

    h = _selu(lin(x, w0, b0))
    h = _selu(lin(h, w1, b1))
    h = _selu(lin(h, w2, b2))
    return lin(h, wmu, bmu), lin(h, wlv, blv)


if __name__ == "__main__":
    key = jax.random.PRNGKey(0)
    kx, kp = jax.random.split(key)

    B = 4
    x = jax.random.normal(kx, (B, IN_DIM), jnp.float32)   # (B, 1000)
    params = init_params(kp)
    packed = pack_params(params)

    mu, log_var = enc_beamform_vae_forward(x, packed)
    jax.block_until_ready((mu, log_var))

    mu_ref, lv_ref = reference_forward(x, params)
    np.testing.assert_allclose(np.asarray(mu), np.asarray(mu_ref), rtol=1e-3, atol=1e-3)
    np.testing.assert_allclose(np.asarray(log_var), np.asarray(lv_ref), rtol=1e-3, atol=1e-3)

    print("KERNEL_OK")
</pallas_src>

<mosaic_0001>
module attributes {stable_mosaic.version = 11 : i64} {
  func.func @_mlp_kernel(%arg0: memref<8x1024xbf16, #tpu.memory_space<vmem>>, %arg1: memref<1024x256xbf16, #tpu.memory_space<vmem>>, %arg2: memref<1x256xf32, #tpu.memory_space<vmem>>, %arg3: memref<256x128xbf16, #tpu.memory_space<vmem>>, %arg4: memref<1x128xf32, #tpu.memory_space<vmem>>, %arg5: memref<128x128xbf16, #tpu.memory_space<vmem>>, %arg6: memref<1x128xf32, #tpu.memory_space<vmem>>, %arg7: memref<128x128xbf16, #tpu.memory_space<vmem>>, %arg8: memref<1x128xf32, #tpu.memory_space<vmem>>, %arg9: memref<8x128xf32, #tpu.memory_space<vmem>>) attributes {dimension_semantics = [], scalar_prefetch = 0 : i64, scratch_operands = 0 : i64, tpu.core_type = #tpu.core_type<tc>} {
    %c0 = arith.constant 0 : index
    %c0_0 = arith.constant 0 : index
    %0 = vector.load %arg0[%c0, %c0_0] : memref<8x1024xbf16, #tpu.memory_space<vmem>>, vector<8x1024xbf16>
    %c0_1 = arith.constant 0 : index
    %c0_2 = arith.constant 0 : index
    %1 = vector.load %arg1[%c0_1, %c0_2] : memref<1024x256xbf16, #tpu.memory_space<vmem>>, vector<1024x256xbf16>
    %cst = arith.constant dense<0.000000e+00> : vector<8x256xf32>
    %2 = tpu.matmul %0, %1, %cst {dimension_numbers = #tpu.dot_dimension_numbers<[1], [0], [0], [1], [0, 0, 1, 1], [], []>} : vector<8x1024xbf16>, vector<1024x256xbf16>, vector<8x256xf32> -> vector<8x256xf32>
    %c0_3 = arith.constant 0 : index
    %c0_4 = arith.constant 0 : index
    %3 = vector.load %arg2[%c0_3, %c0_4] : memref<1x256xf32, #tpu.memory_space<vmem>>, vector<1x256xf32>
    %4 = vector.broadcast %3 : vector<1x256xf32> to vector<8x256xf32>
    %5 = arith.addf %2, %4 : vector<8x256xf32>
    %cst_5 = arith.constant 0.000000e+00 : f32
    %6 = vector.broadcast %cst_5 : f32 to vector<8x256xf32>
    %7 = arith.minimumf %5, %6 : vector<8x256xf32>
    %8 = math.exp %7 : vector<8x256xf32>
    %cst_6 = arith.constant 1.000000e+00 : f32
    %9 = vector.broadcast %cst_6 : f32 to vector<8x256xf32>
    %10 = arith.subf %8, %9 : vector<8x256xf32>
    %cst_7 = arith.constant 1.75809932 : f32
    %11 = vector.broadcast %cst_7 : f32 to vector<8x256xf32>
    %12 = arith.mulf %11, %10 : vector<8x256xf32>
    %cst_8 = arith.constant 0.000000e+00 : f32
    %13 = vector.broadcast %cst_8 : f32 to vector<8x256xf32>
    %14 = arith.cmpf ogt, %5, %13 : vector<8x256xf32>
    %cst_9 = arith.constant 1.05070102 : f32
    %15 = vector.broadcast %cst_9 : f32 to vector<8x256xf32>
    %16 = arith.mulf %15, %5 : vector<8x256xf32>
    %17 = arith.select %14, %16, %12 : vector<8x256xi1>, vector<8x256xf32>
    %18 = arith.truncf %17 : vector<8x256xf32> to vector<8x256xbf16>
    %c0_10 = arith.constant 0 : index
    %c0_11 = arith.constant 0 : index
    %19 = vector.load %arg3[%c0_10, %c0_11] : memref<256x128xbf16, #tpu.memory_space<vmem>>, vector<256x128xbf16>
    %cst_12 = arith.constant dense<0.000000e+00> : vector<8x128xf32>
    %20 = tpu.matmul %18, %19, %cst_12 {dimension_numbers = #tpu.dot_dimension_numbers<[1], [0], [0], [1], [0, 0, 1, 1], [], []>} : vector<8x256xbf16>, vector<256x128xbf16>, vector<8x128xf32> -> vector<8x128xf32>
    %c0_13 = arith.constant 0 : index
    %c0_14 = arith.constant 0 : index
    %21 = vector.load %arg4[%c0_13, %c0_14] : memref<1x128xf32, #tpu.memory_space<vmem>>, vector<1x128xf32>
    %22 = vector.broadcast %21 : vector<1x128xf32> to vector<8x128xf32>
    %23 = arith.addf %20, %22 : vector<8x128xf32>
    %cst_15 = arith.constant 0.000000e+00 : f32
    %24 = vector.broadcast %cst_15 : f32 to vector<8x128xf32>
    %25 = arith.minimumf %23, %24 : vector<8x128xf32>
    %26 = math.exp %25 : vector<8x128xf32>
    %cst_16 = arith.constant 1.000000e+00 : f32
    %27 = vector.broadcast %cst_16 : f32 to vector<8x128xf32>
    %28 = arith.subf %26, %27 : vector<8x128xf32>
    %cst_17 = arith.constant 1.75809932 : f32
    %29 = vector.broadcast %cst_17 : f32 to vector<8x128xf32>
    %30 = arith.mulf %29, %28 : vector<8x128xf32>
    %cst_18 = arith.constant 0.000000e+00 : f32
    %31 = vector.broadcast %cst_18 : f32 to vector<8x128xf32>
    %32 = arith.cmpf ogt, %23, %31 : vector<8x128xf32>
    %cst_19 = arith.constant 1.05070102 : f32
    %33 = vector.broadcast %cst_19 : f32 to vector<8x128xf32>
    %34 = arith.mulf %33, %23 : vector<8x128xf32>
    %35 = arith.select %32, %34, %30 : vector<8x128xi1>, vector<8x128xf32>
    %36 = arith.truncf %35 : vector<8x128xf32> to vector<8x128xbf16>
    %c0_20 = arith.constant 0 : index
    %c0_21 = arith.constant 0 : index
    %37 = vector.load %arg5[%c0_20, %c0_21] : memref<128x128xbf16, #tpu.memory_space<vmem>>, vector<128x128xbf16>
    %cst_22 = arith.constant dense<0.000000e+00> : vector<8x128xf32>
    %38 = tpu.matmul %36, %37, %cst_22 {dimension_numbers = #tpu.dot_dimension_numbers<[1], [0], [0], [1], [0, 0, 1, 1], [], []>} : vector<8x128xbf16>, vector<128x128xbf16>, vector<8x128xf32> -> vector<8x128xf32>
    %c0_23 = arith.constant 0 : index
    %c0_24 = arith.constant 0 : index
    %39 = vector.load %arg6[%c0_23, %c0_24] : memref<1x128xf32, #tpu.memory_space<vmem>>, vector<1x128xf32>
    %40 = vector.broadcast %39 : vector<1x128xf32> to vector<8x128xf32>
    %41 = arith.addf %38, %40 : vector<8x128xf32>
    %cst_25 = arith.constant 0.000000e+00 : f32
    %42 = vector.broadcast %cst_25 : f32 to vector<8x128xf32>
    %43 = arith.minimumf %41, %42 : vector<8x128xf32>
    %44 = math.exp %43 : vector<8x128xf32>
    %cst_26 = arith.constant 1.000000e+00 : f32
    %45 = vector.broadcast %cst_26 : f32 to vector<8x128xf32>
    %46 = arith.subf %44, %45 : vector<8x128xf32>
    %cst_27 = arith.constant 1.75809932 : f32
    %47 = vector.broadcast %cst_27 : f32 to vector<8x128xf32>
    %48 = arith.mulf %47, %46 : vector<8x128xf32>
    %cst_28 = arith.constant 0.000000e+00 : f32
    %49 = vector.broadcast %cst_28 : f32 to vector<8x128xf32>
    %50 = arith.cmpf ogt, %41, %49 : vector<8x128xf32>
    %cst_29 = arith.constant 1.05070102 : f32
    %51 = vector.broadcast %cst_29 : f32 to vector<8x128xf32>
    %52 = arith.mulf %51, %41 : vector<8x128xf32>
    %53 = arith.select %50, %52, %48 : vector<8x128xi1>, vector<8x128xf32>
    %54 = arith.truncf %53 : vector<8x128xf32> to vector<8x128xbf16>
    %c0_30 = arith.constant 0 : index
    %c0_31 = arith.constant 0 : index
    %55 = vector.load %arg7[%c0_30, %c0_31] : memref<128x128xbf16, #tpu.memory_space<vmem>>, vector<128x128xbf16>
    %cst_32 = arith.constant dense<0.000000e+00> : vector<8x128xf32>
    %56 = tpu.matmul %54, %55, %cst_32 {dimension_numbers = #tpu.dot_dimension_numbers<[1], [0], [0], [1], [0, 0, 1, 1], [], []>} : vector<8x128xbf16>, vector<128x128xbf16>, vector<8x128xf32> -> vector<8x128xf32>
    %c0_33 = arith.constant 0 : index
    %c0_34 = arith.constant 0 : index
    %57 = vector.load %arg8[%c0_33, %c0_34] : memref<1x128xf32, #tpu.memory_space<vmem>>, vector<1x128xf32>
    %58 = vector.broadcast %57 : vector<1x128xf32> to vector<8x128xf32>
    %59 = arith.addf %56, %58 : vector<8x128xf32>
    %c0_35 = arith.constant 0 : index
    %c0_36 = arith.constant 0 : index
    %60 = vector.load %arg9[%c0_35, %c0_36] : memref<8x128xf32, #tpu.memory_space<vmem>>, vector<8x128xf32>
    tpu.vector_store %arg9[%c0_35, %c0_36], %59 {strides = array<i32>} : memref<8x128xf32, #tpu.memory_space<vmem>>, vector<8x128xf32>,
    return
  }
}

</mosaic_0001>

<bundles_post_ra>
// kernel: enc_beamform_vae_forward.1
= control target key start
LH: loop header
LB: loop body
LE: loop exit
PB: predicated region body
PF: predicated region fallthrough
CT: control target
= control target key end

     0   :  { %14 = vsyncpa [#allocation3], 0  ;;  %s2266_s0 = inlined_call_operand.vmem [shape: bf16[8,1024], index: 0, kind: input, shape index: {}]   ;;  %s2267_s1 = inlined_call_operand.hbm [shape: bf16[1024,256], index: 1, kind: input, shape index: {}]   ;;  %s2268_s2 = inlined_call_operand.vmem [shape: f32[1,256], index: 2, kind: input, shape index: {}]   ;;  %s2269_s3 = inlined_call_operand.hbm [shape: bf16[256,128], index: 3, kind: input, shape index: {}]   ;;  %s2270_s4 = inlined_call_operand.vmem [shape: f32[1,128], index: 4, kind: input, shape index: {}]   ;;  %s2271_s5 = inlined_call_operand.vmem [shape: bf16[128,128], index: 5, kind: input, shape index: {}]   ;;  %s2272_s6 = inlined_call_operand.vmem [shape: f32[1,128], index: 6, kind: input, shape index: {}]   ;;  %s2273_s7 = inlined_call_operand.hbm [shape: bf16[128,128], index: 7, kind: input, shape index: {}]   ;;  %s2274_s8 = inlined_call_operand.vmem [shape: f32[1,128], index: 8, kind: input, shape index: {}]   ;;  %s2275_s9 = inlined_call_operand.vmem [shape: f32[8,128], index: 9, kind: output, shape index: {}]  }
   0x1   :  { %15 = vsyncpa [#allocation5], 0  ;;  %s2076_s30 = smov [#allocation4]   ;;  %s2006_s13 = scalar_lea.hbm %s2269_s3, 2048 }
   0x2   :  { %s37_s10 = sshll.u32 %s2076_s30, 4  ;;  %p2007_p0 = scmp.ne.s32.totalorder %s2269_s3, %s2006_s13  ;;  %s38_s10 = int_to_ptr.vmem [resolvable:$true] %s37_s10 }
   0x3   :  { %p2010_p1 = scmp.lt.u32.totalorder %s2006_s13, %s2269_s3 }
   0x5   :  { %p2012_p2 = pnand %p2010_p1, %p2007_p0 }
   0x7   :  { %2015 = shalt.err (!%p2012_p2)
}
   0x8   :  { %s2016_s18 = scalar_lea.vmem %s38_s10, 2048  ;;  %p2021_p4 = scmp.lt.s32.totalorder %s38_s10, %s38_s10 }
   0x9   :  { %p2017_p3 = scmp.ne.s32.totalorder %s38_s10, %s2016_s18  ;;  %p2022_p5 = scmp.lt.s32.totalorder %s2016_s18, %s2016_s18 }
   0xb   :  { %p2023_p6 = por %p2022_p5, %p2021_p4 }
   0xd   :  { %p2024_p7 = pnand %p2023_p6, %p2017_p3 }
   0xf   :  { %2027 = shalt.err (!%p2024_p7)
}
  0x10   :  { %s2077_s19 = smov 64   ;;  %s2078_s20 = smov 4  }
  0x11   :  { %43 = dma.hbm_to_vmem [thread:$0]  %s2269_s3, 2048, %s38_s10, [#allocation5], %s2077_s19, %s2077_s19, %s2078_s20  }
  0x12   :  { %s2079_s23 = smov [#allocation2]   ;;  %s2028_s27 = scalar_lea.hbm %s2267_s1, 16384 }
  0x13   :  { %s23_s24 = sshll.u32 %s2079_s23, 4  ;;  %p2029_p8 = scmp.ne.s32.totalorder %s2267_s1, %s2028_s27  ;;  %s24_s24 = int_to_ptr.vmem [resolvable:$true] %s23_s24 }
  0x14   :  { %p2032_p9 = scmp.lt.u32.totalorder %s2028_s27, %s2267_s1 }
  0x16   :  { %p2034_p10 = pnand %p2032_p9, %p2029_p8 }
  0x18   :  { %2037 = shalt.err (!%p2034_p10)
}
  0x19   :  { %s2038_s12 = scalar_lea.vmem %s24_s24, 16384  ;;  %p2043_p12 = scmp.lt.s32.totalorder %s24_s24, %s24_s24 }
  0x1a   :  { %p2039_p11 = scmp.ne.s32.totalorder %s24_s24, %s2038_s12  ;;  %p2044_p13 = scmp.lt.s32.totalorder %s2038_s12, %s2038_s12 }
  0x1c   :  { %p2045_p0 = por %p2044_p13, %p2043_p12 }
  0x1e   :  { %p2046_p1 = pnand %p2045_p0, %p2039_p11 }
  0x20   :  { %2049 = shalt.err (!%p2046_p1)
}
  0x21   :  { %s2080_s3 = smov 128   ;;  %s2081_s10 = smov 8  }
  0x22   :  { %29 = dma.hbm_to_vmem [thread:$0]  %s2267_s1, 16384, %s24_s24, [#allocation3], %s2080_s3, %s2080_s3, %s2081_s10  }
  0x23   :  { %s2082_s15 = smov [#allocation6]   ;;  %s2050_s21 = scalar_lea.hbm %s2273_s7, 1024 }
  0x24   :  { %s55_s16 = sshll.u32 %s2082_s15, 4  ;;  %p2051_p2 = scmp.ne.s32.totalorder %s2273_s7, %s2050_s21  ;;  %s56_s16 = int_to_ptr.vmem [resolvable:$true] %s55_s16 }
  0x25   :  { %p2054_p3 = scmp.lt.u32.totalorder %s2050_s21, %s2273_s7 }
  0x27   :  { %p2056_p4 = pnand %p2054_p3, %p2051_p2 }
  0x29   :  { %2059 = shalt.err (!%p2056_p4)
}
  0x2a   :  { %s2060_s27 = scalar_lea.vmem %s56_s16, 1024  ;;  %p2065_p6 = scmp.lt.s32.totalorder %s56_s16, %s56_s16 }
  0x2b   :  { %p2061_p5 = scmp.ne.s32.totalorder %s56_s16, %s2060_s27  ;;  %p2066_p7 = scmp.lt.s32.totalorder %s2060_s27, %s2060_s27 }
  0x2d   :  { %p2067_p8 = por %p2066_p7, %p2065_p6 }
  0x2f   :  { %p2068_p9 = pnand %p2067_p8, %p2061_p5 }
  0x31   :  { %2071 = shalt.err (!%p2068_p9)
}
  0x32   :  { %61 = dma.hbm_to_vmem [thread:$0]  %s2273_s7, 1024, %s56_s16, [#allocation5], %s2077_s19, %s2077_s19, %s2078_s20  }
  0x33   :  { %2072 = dma.done.wait [#allocation3], 16384  }
  0x34   :  { %2073 = vsyncadd [#allocation3], 4294950912 }
  0x35   :  { %2074 = dma.done.wait [#allocation5], 3072  }
  0x36   :  { %2075 = vsyncadd [#allocation5], 4294964224  ;;  %v1766_v0 = vld [vmem:[#allocation2 + $0x104] ss:$8 sps:$4 sm:$0xff]   ;;  %v1768_v1 = vld [vmem:[#allocation2 + $0x100] ss:$8 sps:$4 sm:$0xff]  }
  0x37   :  { %927 = vmatprep.subr.bf16.mxu0 %v1766_v0  ;;  %v1769_v2 = vld [vmem:[#allocation2 + $0x114] ss:$8 sps:$4 sm:$0xff]   ;;  %v1771_v3 = vld [vmem:[#allocation2 + $0x110] ss:$8 sps:$4 sm:$0xff]   ;;  %v1772_v4 = vld [vmem:[#allocation2 + $0x124] ss:$8 sps:$4 sm:$0xff]  }
  0x38   :  { %928 = vmatpush1.bf16.msra.mxu0 %v1768_v1  ;;  %v1774_v5 = vld [vmem:[#allocation2 + $0x120] ss:$8 sps:$4 sm:$0xff]   ;;  %v1775_v6 = vld [vmem:[#allocation2 + $0x134] ss:$8 sps:$4 sm:$0xff]   ;;  %v1777_v7 = vld [vmem:[#allocation2 + $0x130] ss:$8 sps:$4 sm:$0xff]  }
  0x39   :  { %929 = vmatprep.subr.bf16.mxu0 %v1769_v2  ;;  %v1778_v8 = vld [vmem:[#allocation2 + $0x144] ss:$8 sps:$4 sm:$0xff]   ;;  %v1780_v9 = vld [vmem:[#allocation2 + $0x140] ss:$8 sps:$4 sm:$0xff]   ;;  %v1781_v10 = vld [vmem:[#allocation2 + $0x154] ss:$8 sps:$4 sm:$0xff]  }
  0x3a   :  { %v1783_v11 = vld [vmem:[#allocation2 + $0x150] ss:$8 sps:$4 sm:$0xff]   ;;  %v1784_v12 = vld [vmem:[#allocation2 + $0x164] ss:$8 sps:$4 sm:$0xff]   ;;  %v1786_v15 = vld [vmem:[#allocation2 + $0x160] ss:$8 sps:$4 sm:$0xff]  }
  0x3b   :  { %v2180_v13 = vld [vmem:[%s2266_s0 + $0x8] sm:$0xff]  ;;  %v1787_v16 = vld [vmem:[#allocation2 + $0x174] ss:$8 sps:$4 sm:$0xff]   ;;  %v1789_v17 = vld [vmem:[#allocation2 + $0x170] ss:$8 sps:$4 sm:$0xff]   ;;  %vm2084_vm2 = vmmov 0  }
  0x3c   :  { %930 = vmatpush1.bf16.msra.mxu0 %v1771_v3  ;;  %v1493_v14 = vcombine.high %v2180_v13, %v2180_v13  ;;  %v1790_v18 = vld [vmem:[#allocation2 + $0x184] ss:$8 sps:$4 sm:$0xff]   ;;  %v1792_v19 = vld [vmem:[#allocation2 + $0x180] ss:$8 sps:$4 sm:$0xff]   ;;  %v1793_v20 = vld [vmem:[#allocation2 + $0x194] ss:$8 sps:$4 sm:$0xff]   ;;  %v1492_v48 = vcombine.low %v2180_v13, %v2180_v13 }
  0x3d   :  { %931 = vmatprep.subr.bf16.mxu0 %v1772_v4  ;;  %v1795_v21 = vld [vmem:[#allocation2 + $0x190] ss:$8 sps:$4 sm:$0xff]   ;;  %v1796_v22 = vld [vmem:[#allocation2 + $0x1a4] ss:$8 sps:$4 sm:$0xff]   ;;  %v1798_v23 = vld [vmem:[#allocation2 + $0x1a0] ss:$8 sps:$4 sm:$0xff]  }
  0x3e   :  { %959 = vmatprep.mubr.bf16.mxu0 %v1493_v14  ;;  %v1799_v24 = vld [vmem:[#allocation2 + $0x1b4] ss:$8 sps:$4 sm:$0xff]   ;;  %v1861_v25 = vld [vmem:[#allocation2 + $0x4] ss:$8 sps:$4 sm:$0xff]   ;;  %v1863_v26 = vld [vmem:[#allocation2] ss:$8 sps:$4 sm:$0xff]  }
  0x3f   :  { %v1801_v27 = vld [vmem:[#allocation2 + $0x1b0] ss:$8 sps:$4 sm:$0xff]   ;;  %v1802_v28 = vld [vmem:[#allocation2 + $0x1c4] ss:$8 sps:$4 sm:$0xff]   ;;  %886 = vmatprep.subr.bf16.mxu1 %v1861_v25  ;;  %v1867_v29 = vld [vmem:[#allocation2 + $0x14] ss:$8 sps:$4 sm:$0xff]  }
  0x40   :  { %932 = vmatpush1.bf16.msra.mxu0 %v1774_v5  ;;  %887 = vmatpush1.bf16.msra.mxu1 %v1863_v26  ;;  %v1869_v30 = vld [vmem:[#allocation2 + $0x10] ss:$8 sps:$4 sm:$0xff]   ;;  %v1804_v31 = vld [vmem:[#allocation2 + $0x1c0] ss:$8 sps:$4 sm:$0xff]   ;;  %v1805_v32 = vld [vmem:[#allocation2 + $0x1d4] ss:$8 sps:$4 sm:$0xff]  }
  0x41   :  { %933 = vmatprep.subr.bf16.mxu0 %v1775_v6  ;;  %888 = vmatprep.subr.bf16.mxu1 %v1867_v29  ;;  %v1875_v33 = vld [vmem:[#allocation2 + $0x24] ss:$8 sps:$4 sm:$0xff]   ;;  %v1877_v34 = vld [vmem:[#allocation2 + $0x20] ss:$8 sps:$4 sm:$0xff]   ;;  %v1881_v35 = vld [vmem:[#allocation2 + $0x34] ss:$8 sps:$4 sm:$0xff]  }
  0x42   :  { %v1807_v36 = vld [vmem:[#allocation2 + $0x1d0] ss:$8 sps:$4 sm:$0xff]   ;;  %v1808_v37 = vld [vmem:[#allocation2 + $0x1e4] ss:$8 sps:$4 sm:$0xff]   ;;  %v1810_v40 = vld [vmem:[#allocation2 + $0x1e0] ss:$8 sps:$4 sm:$0xff]  }
  0x43   :  { %v1883_v38 = vld [vmem:[#allocation2 + $0x30] ss:$8 sps:$4 sm:$0xff]   ;;  %v1887_v39 = vld [vmem:[#allocation2 + $0x44] ss:$8 sps:$4 sm:$0xff]   ;;  %v1811_v41 = vld [vmem:[#allocation2 + $0x1f4] ss:$8 sps:$4 sm:$0xff]  }
  0x44   :  { %934 = vmatpush1.bf16.msra.mxu0 %v1777_v7  ;;  %889 = vmatpush1.bf16.msra.mxu1 %v1869_v30  ;;  %v1889_v42 = vld [vmem:[#allocation2 + $0x40] ss:$8 sps:$4 sm:$0xff]   ;;  %v1893_v43 = vld [vmem:[#allocation2 + $0x54] ss:$8 sps:$4 sm:$0xff]   ;;  %v1813_v44 = vld [vmem:[#allocation2 + $0x1f0] ss:$8 sps:$4 sm:$0xff]  }
  0x45   :  { %935 = vmatprep.subr.bf16.mxu0 %v1778_v8  ;;  %890 = vmatprep.subr.bf16.mxu1 %v1875_v33  ;;  %v1818_v45 = vld [vmem:[#allocation2 + $0x204] ss:$8 sps:$4 sm:$0xff]   ;;  %v2187_v46 = vld [vmem:[%s2266_s0 + $0x10] sm:$0xff]  ;;  %v1816_v50 = vld [vmem:[#allocation2 + $0x200] ss:$8 sps:$4 sm:$0xff]  }
  0x46   :  { %v1895_v47 = vld [vmem:[#allocation2 + $0x50] ss:$8 sps:$4 sm:$0xff]   ;;  %v1899_v49 = vld [vmem:[#allocation2 + $0x64] ss:$8 sps:$4 sm:$0xff]   ;;  %v1495_v51 = vcombine.high %v2187_v46, %v2187_v46  ;;  %v1821_v52 = vld [vmem:[#allocation2 + $0x214] ss:$8 sps:$4 sm:$0xff]  }
  0x47   :  { %v1901_v53 = vld [vmem:[#allocation2 + $0x60] ss:$8 sps:$4 sm:$0xff]   ;;  %v1905_v54 = vld [vmem:[#allocation2 + $0x74] ss:$8 sps:$4 sm:$0xff]   ;;  %v1819_v55 = vld [vmem:[#allocation2 + $0x210] ss:$8 sps:$4 sm:$0xff]  }
  0x48   :  { %936 = vmatpush1.bf16.msra.mxu0 %v1780_v9  ;;  %891 = vmatpush1.bf16.msra.mxu1 %v1877_v34  ;;  %v1824_v56 = vld [vmem:[#allocation2 + $0x224] ss:$8 sps:$4 sm:$0xff]   ;;  %v1907_v57 = vld [vmem:[#allocation2 + $0x70] ss:$8 sps:$4 sm:$0xff]   ;;  %v1822_v59 = vld [vmem:[#allocation2 + $0x220] ss:$8 sps:$4 sm:$0xff]  }
  0x49   :  { %937 = vmatprep.subr.bf16.mxu0 %v1781_v10  ;;  %892 = vmatprep.subr.bf16.mxu1 %v1881_v35  ;;  %v1911_v58 = vld [vmem:[#allocation2 + $0x84] ss:$8 sps:$4 sm:$0xff]   ;;  %v1827_v60 = vld [vmem:[#allocation2 + $0x234] ss:$8 sps:$4 sm:$0xff]   ;;  %v1913_v61 = vld [vmem:[#allocation2 + $0x80] ss:$8 sps:$4 sm:$0xff]  }
  0x4a   :  { %v1917_v62 = vld [vmem:[#allocation2 + $0x94] ss:$8 sps:$4 sm:$0xff]   ;;  %v1825_v63 = vld [vmem:[#allocation2 + $0x230] ss:$8 sps:$4 sm:$0xff]   ;;  %v1830_v0 = vld [vmem:[#allocation2 + $0x244] ss:$8 sps:$4 sm:$0xff]  }
  0x4b   :  { %v1919_v1 = vld [vmem:[#allocation2 + $0x90] ss:$8 sps:$4 sm:$0xff]   ;;  %v1923_v2 = vld [vmem:[#allocation2 + $0xa4] ss:$8 sps:$4 sm:$0xff]   ;;  %v1828_v3 = vld [vmem:[#allocation2 + $0x240] ss:$8 sps:$4 sm:$0xff]  }
  0x4c   :  { %938 = vmatpush1.bf16.msra.mxu0 %v1783_v11  ;;  %893 = vmatpush1.bf16.msra.mxu1 %v1883_v38  ;;  %v1833_v4 = vld [vmem:[#allocation2 + $0x254] ss:$8 sps:$4 sm:$0xff]   ;;  %v1925_v5 = vld [vmem:[#allocation2 + $0xa0] ss:$8 sps:$4 sm:$0xff]   ;;  %v1831_v7 = vld [vmem:[#allocation2 + $0x250] ss:$8 sps:$4 sm:$0xff]  }
  0x4d   :  { %939 = vmatprep.subr.bf16.mxu0 %v1784_v12  ;;  %894 = vmatprep.subr.bf16.mxu1 %v1887_v39  ;;  %v1929_v6 = vld [vmem:[#allocation2 + $0xb4] ss:$8 sps:$4 sm:$0xff]   ;;  %v1836_v8 = vld [vmem:[#allocation2 + $0x264] ss:$8 sps:$4 sm:$0xff]   ;;  %v1931_v10 = vld [vmem:[#allocation2 + $0xb0] ss:$8 sps:$4 sm:$0xff]  }
  0x4e   :  { %v74_v9 = vld [vmem:[%s2266_s0] sm:$0xff]  ;;  %v1839_v13 = vld [vmem:[#allocation2 + $0x274] ss:$8 sps:$4 sm:$0xff]   ;;  %v1843_v25 = vld [vmem:[#allocation2 + $0x290] ss:$8 sps:$4 sm:$0xff]  }
  0x4f   :  { %v1491_v11 = vcombine.high %v74_v9, %v74_v9  ;;  %v1834_v12 = vld [vmem:[#allocation2 + $0x260] ss:$8 sps:$4 sm:$0xff]   ;;  %v1935_v14 = vld [vmem:[#allocation2 + $0xc4] ss:$8 sps:$4 sm:$0xff]   ;;  %v1851_v29 = vld [vmem:[#allocation2 + $0x2b4] ss:$8 sps:$4 sm:$0xff]   ;;  %v1490_v30 = vcombine.low %v74_v9, %v74_v9 }
  0x50   :  { %940 = vmatpush1.bf16.msra.mxu0 %v1786_v15  ;;  %895 = vmatpush1.bf16.msra.mxu1 %v1889_v42  ;;  %v1937_v15 = vld [vmem:[#allocation2 + $0xc0] ss:$8 sps:$4 sm:$0xff]   ;;  %v1848_v26 = vld [vmem:[#allocation2 + $0x2a4] ss:$8 sps:$4 sm:$0xff]   ;;  %v1857_v34 = vld [vmem:[#allocation2 + $0x2d4] ss:$8 sps:$4 sm:$0xff]   ;;  %v1494_v42 = vcombine.low %v2187_v46, %v2187_v46 }
  0x51   :  { %941 = vmatprep.subr.bf16.mxu0 %v1787_v16  ;;  %896 = vmatprep.subr.bf16.mxu1 %v1893_v43  ;;  %v1941_v16 = vld [vmem:[#allocation2 + $0xd4] ss:$8 sps:$4 sm:$0xff]   ;;  %v1852_v33 = vld [vmem:[#allocation2 + $0x2c0] ss:$8 sps:$4 sm:$0xff]   ;;  %v1855_v35 = vld [vmem:[#allocation2 + $0x2d0] ss:$8 sps:$4 sm:$0xff]  }
  0x52   :  { %918 = vmatprep.mubr.bf16.mxu1 %v1491_v11  ;;  %v1866_v38 = vld [vmem:[#allocation2 + $0x2f4] ss:$8 sps:$4 sm:$0xff]   ;;  %v1864_v39 = vld [vmem:[#allocation2 + $0x2f0] ss:$8 sps:$4 sm:$0xff]   ;;  %v1872_v43 = vld [vmem:[#allocation2 + $0x300] ss:$8 sps:$4 sm:$0xff]  }
  0x53   :  { %v1898_v46 = vld [vmem:[#allocation2 + $0x344] ss:$8 sps:$4 sm:$0xff]   ;;  %v1963_v9 = vld [vmem:[#allocation2 + $0x3f4] ss:$8 sps:$4 sm:$0xff]  }
  0x54   :  { %942 = vmatpush1.bf16.msra.mxu0 %v1789_v17  ;;  %897 = vmatpush1.bf16.msra.mxu1 %v1895_v47  ;;  %v1837_v17 = vld [vmem:[#allocation2 + $0x270] ss:$8 sps:$4 sm:$0xff]  }
  0x55   :  { %943 = vmatprep.subr.bf16.mxu0 %v1790_v18  ;;  %898 = vmatprep.subr.bf16.mxu1 %v1899_v49  ;;  %v1842_v18 = vld [vmem:[#allocation2 + $0x284] ss:$8 sps:$4 sm:$0xff]   ;;  %v1878_v47 = vld [vmem:[#allocation2 + $0x310] ss:$8 sps:$4 sm:$0xff]   ;;  %v1884_v49 = vld [vmem:[#allocation2 + $0x320] ss:$8 sps:$4 sm:$0xff]  }
  0x58   :  { %944 = vmatpush1.bf16.msra.mxu0 %v1792_v19  ;;  %899 = vmatpush1.bf16.msra.mxu1 %v1901_v53  ;;  %v1943_v19 = vld [vmem:[#allocation2 + $0xd0] ss:$8 sps:$4 sm:$0xff]   ;;  %v1904_v53 = vld [vmem:[#allocation2 + $0x354] ss:$8 sps:$4 sm:$0xff]  }
  0x59   :  { %945 = vmatprep.subr.bf16.mxu0 %v1793_v20  ;;  %900 = vmatprep.subr.bf16.mxu1 %v1905_v54  ;;  %v1947_v20 = vld [vmem:[#allocation2 + $0xe4] ss:$8 sps:$4 sm:$0xff]   ;;  %v1902_v54 = vld [vmem:[#allocation2 + $0x350] ss:$8 sps:$4 sm:$0xff]  }
  0x5c   :  { %946 = vmatpush1.bf16.msra.mxu0 %v1795_v21  ;;  %901 = vmatpush1.bf16.msra.mxu1 %v1907_v57  ;;  %v1840_v21 = vld [vmem:[#allocation2 + $0x280] ss:$8 sps:$4 sm:$0xff]   ;;  %v1916_v57 = vld [vmem:[#allocation2 + $0x374] ss:$8 sps:$4 sm:$0xff]  }
  0x5d   :  { %947 = vmatprep.subr.bf16.mxu0 %v1796_v22  ;;  %902 = vmatprep.subr.bf16.mxu1 %v1911_v58  ;;  %v1845_v22 = vld [vmem:[#allocation2 + $0x294] ss:$8 sps:$4 sm:$0xff]   ;;  %v1914_v58 = vld [vmem:[#allocation2 + $0x370] ss:$8 sps:$4 sm:$0xff]  }
  0x60   :  { %948 = vmatpush1.bf16.msra.mxu0 %v1798_v23  ;;  %903 = vmatpush1.bf16.msra.mxu1 %v1913_v61  ;;  %v1949_v23 = vld [vmem:[#allocation2 + $0xe0] ss:$8 sps:$4 sm:$0xff]   ;;  %v1928_v61 = vld [vmem:[#allocation2 + $0x394] ss:$8 sps:$4 sm:$0xff]  }
  0x61   :  { %949 = vmatprep.subr.bf16.mxu0 %v1799_v24  ;;  %904 = vmatprep.subr.bf16.mxu1 %v1917_v62  ;;  %v1953_v24 = vld [vmem:[#allocation2 + $0xf4] ss:$8 sps:$4 sm:$0xff]   ;;  %v1926_v62 = vld [vmem:[#allocation2 + $0x390] ss:$8 sps:$4 sm:$0xff]  }
  0x64   :  { %950 = vmatpush1.bf16.msra.mxu0 %v1801_v27  ;;  %905 = vmatpush1.bf16.msra.mxu1 %v1919_v1  ;;  %v1955_v27 = vld [vmem:[#allocation2 + $0xf0] ss:$8 sps:$4 sm:$0xff]   ;;  %v1940_v1 = vld [vmem:[#allocation2 + $0x3b4] ss:$8 sps:$4 sm:$0xff]  }
  0x65   :  { %951 = vmatprep.subr.bf16.mxu0 %v1802_v28  ;;  %906 = vmatprep.subr.bf16.mxu1 %v1923_v2  ;;  %v1846_v28 = vld [vmem:[#allocation2 + $0x2a0] ss:$8 sps:$4 sm:$0xff]   ;;  %v1938_v2 = vld [vmem:[#allocation2 + $0x3b0] ss:$8 sps:$4 sm:$0xff]  }
  0x68   :  { %952 = vmatpush1.bf16.msra.mxu0 %v1804_v31  ;;  %907 = vmatpush1.bf16.msra.mxu1 %v1925_v5  ;;  %v1849_v31 = vld [vmem:[#allocation2 + $0x2b0] ss:$8 sps:$4 sm:$0xff]   ;;  %v1952_v5 = vld [vmem:[#allocation2 + $0x3d4] ss:$8 sps:$4 sm:$0xff]  }
  0x69   :  { %953 = vmatprep.subr.bf16.mxu0 %v1805_v32  ;;  %908 = vmatprep.subr.bf16.mxu1 %v1929_v6  ;;  %v1854_v32 = vld [vmem:[#allocation2 + $0x2c4] ss:$8 sps:$4 sm:$0xff]   ;;  %v1950_v6 = vld [vmem:[#allocation2 + $0x3d0] ss:$8 sps:$4 sm:$0xff]  }
  0x6c   :  { %954 = vmatpush1.bf16.msra.mxu0 %v1807_v36  ;;  %909 = vmatpush1.bf16.msra.mxu1 %v1931_v10  ;;  %v1860_v36 = vld [vmem:[#allocation2 + $0x2e4] ss:$8 sps:$4 sm:$0xff]   ;;  %v1961_v10 = vld [vmem:[#allocation2 + $0x3f0] ss:$8 sps:$4 sm:$0xff]  }
  0x6d   :  { %955 = vmatprep.subr.bf16.mxu0 %v1808_v37  ;;  %910 = vmatprep.subr.bf16.mxu1 %v1935_v14  ;;  %v1858_v37 = vld [vmem:[#allocation2 + $0x2e0] ss:$8 sps:$4 sm:$0xff]  }
  0x6e   :  { %v1968_v14 = vld [vmem:[#allocation4 + $0x48] sm:$0xff]  }
  0x70   :  { %956 = vmatpush1.bf16.msra.mxu0 %v1810_v40  ;;  %911 = vmatpush1.bf16.msra.mxu1 %v1937_v15  ;;  %v1874_v40 = vld [vmem:[#allocation2 + $0x304] ss:$8 sps:$4 sm:$0xff]  }
  0x71   :  { %957 = vmatprep.subr.bf16.mxu0 %v1811_v41  ;;  %912 = vmatprep.subr.bf16.mxu1 %v1941_v16  ;;  %v2199_v41 = vld [vmem:[%s2266_s0 + $0x18] sm:$0xff]  ;;  %v1969_v15 = vld [vmem:[#allocation4 + $0x8] sm:$0xff]   ;;  %v1970_v16 = vld [vmem:[#allocation4 + $0x50] sm:$0xff]  }
  0x72   :  { %v1496_v11 = vcombine.low %v2199_v41, %v2199_v41 }
  0x74   :  { %958 = vmatpush1.bf16.msra.mxu0 %v1813_v44  ;;  %913 = vmatpush1.bf16.msra.mxu1 %v1943_v19  ;;  %v1497_v44 = vcombine.high %v2199_v41, %v2199_v41  ;;  %v1973_v19 = vld [vmem:[#allocation4 + $0x18] sm:$0xff]  }
  0x75   :  { %968 = vmatprep.subr.bf16.mxu0 %v1818_v45  ;;  %914 = vmatprep.subr.bf16.mxu1 %v1947_v20  ;;  %v1880_v45 = vld [vmem:[#allocation2 + $0x314] ss:$8 sps:$4 sm:$0xff]   ;;  %v1974_v20 = vld [vmem:[#allocation4 + $0x60] sm:$0xff]  }
  0x77   :  { %960 = vmatmul.mubr.bf16.vlgmr.msra.gmra.mrb[0].mxu0 %v1492_v48  ;;  %v1886_v48 = vld [vmem:[#allocation2 + $0x324] ss:$8 sps:$4 sm:$0xff]  }
  0x78   :  { %969 = vmatpush1.bf16.msra.mxu0 %v1816_v50  ;;  %1000 = vmatprep.mubr.bf16.mxu0 %v1495_v51  ;;  %v1892_v50 = vld [vmem:[#allocation2 + $0x334] ss:$8 sps:$4 sm:$0xff]   ;;  %v1890_v51 = vld [vmem:[#allocation2 + $0x330] ss:$8 sps:$4 sm:$0xff]  }
  0x79   :  { %970 = vmatprep.subr.bf16.mxu0 %v1821_v52  ;;  %915 = vmatpush1.bf16.msra.mxu1 %v1949_v23  ;;  %v1896_v52 = vld [vmem:[#allocation2 + $0x340] ss:$8 sps:$4 sm:$0xff]  }
  0x7a   :  { %916 = vmatprep.subr.bf16.mxu1 %v1953_v24  ;;  %v1977_v23 = vld [vmem:[#allocation4 + $0x28] sm:$0xff]   ;;  %v1978_v24 = vld [vmem:[#allocation4 + $0x70] sm:$0xff]  }
  0x7c   :  { %971 = vmatpush1.bf16.msra.mxu0 %v1819_v55  ;;  %v1910_v55 = vld [vmem:[#allocation2 + $0x364] ss:$8 sps:$4 sm:$0xff]  }
  0x7d   :  { %972 = vmatprep.subr.bf16.mxu0 %v1824_v56  ;;  %917 = vmatpush1.bf16.msra.mxu1 %v1955_v27  ;;  %v1908_v56 = vld [vmem:[#allocation2 + $0x360] ss:$8 sps:$4 sm:$0xff]   ;;  %v1981_v27 = vld [vmem:[#allocation4 + $0x38] sm:$0xff]  }
  0x80   :  { %973 = vmatpush1.bf16.msra.mxu0 %v1822_v59  ;;  %919 = vmatmul.mubr.bf16.vlgmr.msra.gmra.mrb[0].mxu1 %v1490_v30  ;;  %v1922_v59 = vld [vmem:[#allocation2 + $0x384] ss:$8 sps:$4 sm:$0xff]  }
  0x81   :  { %974 = vmatprep.subr.bf16.mxu0 %v1827_v60  ;;  %v1920_v60 = vld [vmem:[#allocation2 + $0x380] ss:$8 sps:$4 sm:$0xff]  }
  0x84   :  { %975 = vmatpush1.bf16.msra.mxu0 %v1825_v63  ;;  %v1934_v63 = vld [vmem:[#allocation2 + $0x3a4] ss:$8 sps:$4 sm:$0xff]  }
  0x85   :  { %976 = vmatprep.subr.bf16.mxu0 %v1830_v0  ;;  %v1932_v0 = vld [vmem:[#allocation2 + $0x3a0] ss:$8 sps:$4 sm:$0xff]  }
  0x88   :  { %977 = vmatpush1.bf16.msra.mxu0 %v1828_v3  ;;  %v1946_v3 = vld [vmem:[#allocation2 + $0x3c4] ss:$8 sps:$4 sm:$0xff]  }
  0x89   :  { %978 = vmatprep.subr.bf16.mxu0 %v1833_v4  ;;  %v1944_v4 = vld [vmem:[#allocation2 + $0x3c0] ss:$8 sps:$4 sm:$0xff]  }
  0x8c   :  { %979 = vmatpush1.bf16.msra.mxu0 %v1831_v7  ;;  %v1958_v7 = vld [vmem:[#allocation2 + $0x3e4] ss:$8 sps:$4 sm:$0xff]  }
  0x8d   :  { %980 = vmatprep.subr.bf16.mxu0 %v1836_v8  ;;  %v1956_v8 = vld [vmem:[#allocation2 + $0x3e0] ss:$8 sps:$4 sm:$0xff]  }
  0x90   :  { %981 = vmatpush1.bf16.msra.mxu0 %v1834_v12  ;;  %v1966_v12 = vld [vmem:[#allocation4 + $0x40] sm:$0xff]  }
  0x91   :  { %982 = vmatprep.subr.bf16.mxu0 %v1839_v13  ;;  %v1967_v13 = vld [vmem:[#allocation4] sm:$0xff]   ;;  %1665 = vmatprep.subr.bf16.mxu1 %v1966_v12 }
  0x92   :  { %1666 = vmatpush3.bf16.msra.mxu1 %v1967_v13 }
  0x93   :  { %1667 = vmatprep.subr.bf16.mxu1 %v1968_v14 }
  0x94   :  { %983 = vmatpush1.bf16.msra.mxu0 %v1837_v17  ;;  %v1971_v17 = vld [vmem:[#allocation4 + $0x10] sm:$0xff]  }
  0x95   :  { %984 = vmatprep.subr.bf16.mxu0 %v1842_v18  ;;  %v1972_v18 = vld [vmem:[#allocation4 + $0x58] sm:$0xff]  }
  0x96   :  { %1668 = vmatpush3.bf16.msra.mxu1 %v1969_v15 }
  0x97   :  { %1669 = vmatprep.subr.bf16.mxu1 %v1970_v16 }
  0x98   :  { %985 = vmatpush1.bf16.msra.mxu0 %v1840_v21  ;;  %v1975_v21 = vld [vmem:[#allocation4 + $0x20] sm:$0xff]  }
  0x99   :  { %986 = vmatprep.subr.bf16.mxu0 %v1845_v22  ;;  %v1976_v22 = vld [vmem:[#allocation4 + $0x68] sm:$0xff]  }
  0x9a   :  { %1670 = vmatpush3.bf16.msra.mxu1 %v1971_v17 }
  0x9b   :  { %1671 = vmatprep.subr.bf16.mxu1 %v1972_v18 }
  0x9c   :  { %987 = vmatpush1.bf16.msra.mxu0 %v1843_v25  ;;  %v1979_v25 = vld [vmem:[#allocation4 + $0x30] sm:$0xff]  }
  0x9d   :  { %988 = vmatprep.subr.bf16.mxu0 %v1848_v26  ;;  %v1980_v26 = vld [vmem:[#allocation4 + $0x78] sm:$0xff]  }
  0x9e   :  { %1672 = vmatpush3.bf16.msra.mxu1 %v1973_v19 }
  0x9f   :  { %1673 = vmatprep.subr.bf16.mxu1 %v1974_v20 }
  0xa0   :  { %989 = vmatpush1.bf16.msra.mxu0 %v1846_v28  ;;  %v2083_v28 = vmov 0.0  }
  0xa1   :  { %990 = vmatprep.subr.bf16.mxu0 %v1851_v29 }
  0xa2   :  { %1674 = vmatpush3.bf16.msra.mxu1 %v1975_v21 }
  0xa3   :  { %1675 = vmatprep.subr.bf16.mxu1 %v1976_v22  ;;  %v1990_v22 = vld [vmem:[#allocation6] sm:$0xff]  }
  0xa4   :  { %991 = vmatpush1.bf16.msra.mxu0 %v1849_v31 }
  0xa5   :  { %992 = vmatprep.subr.bf16.mxu0 %v1854_v32 }
  0xa6   :  { %1676 = vmatpush3.bf16.msra.mxu1 %v1977_v23 }
  0xa7   :  { %1677 = vmatprep.subr.bf16.mxu1 %v1978_v24  ;;  %v1991_v24 = vld [vmem:[#allocation6 + $0x8] sm:$0xff]  }
  0xa8   :  { %993 = vmatpush1.bf16.msra.mxu0 %v1852_v33  ;;  %v208_v33 = vlaneseq }
  0xa9   :  { %994 = vmatprep.subr.bf16.mxu0 %v1857_v34 }
  0xaa   :  { %1678 = vmatpush3.bf16.msra.mxu1 %v1979_v25  ;;  %v209_v34 = vshrl.u32 %v208_v33, 7  ;;  %v1992_v25 = vld [vmem:[#allocation6 + $0x10] sm:$0xff]  }
  0xab   :  { %1679 = vmatprep.subr.bf16.mxu1 %v1980_v26  ;;  %v1993_v26 = vld [vmem:[#allocation6 + $0x18] sm:$0xff]  }
  0xac   :  { %995 = vmatpush1.bf16.msra.mxu0 %v1855_v35  ;;  %v210_v35 = vsub.s32 0, %v209_v34 }
  0xad   :  { %996 = vmatprep.subr.bf16.mxu0 %v1860_v36  ;;  %v206_v36 = vld [vmem:[%s2268_s2] sm:$0x3] }
  0xae   :  { %1680 = vmatpush3.bf16.msra.mxu1 %v1981_v27  ;;  %v1994_v27 = vld [vmem:[#allocation6 + $0x20] sm:$0xff]  }
  0xaf   :  { %1705 = vmatprep.subr.bf16.mxu1 %v2083_v28 }
  0xb0   :  { %997 = vmatpush1.bf16.msra.mxu0 %v1858_v37  ;;  %v214_v37 = vsub.s32 1, %v209_v34 }
  0xb1   :  { %998 = vmatprep.subr.bf16.mxu0 %v1866_v38  ;;  %v211_v38 = vrot.slane %v206_v36, %v210_v35 }
  0xb4   :  { %999 = vmatpush1.bf16.msra.mxu0 %v1864_v39  ;;  %v215_v39 = vrot.slane %v206_v36, %v214_v37 }
  0xb5   :  { %1009 = vmatprep.subr.bf16.mxu0 %v1874_v40 }
  0xb7   :  { %1001 = vmatmul.mubr.bf16.vlgmr.msra.gmra.mrb[0].mxu0 %v1494_v42 }
  0xb8   :  { %1010 = vmatpush1.bf16.msra.mxu0 %v1872_v43  ;;  %1041 = vmatprep.mubr.bf16.mxu0 %v1497_v44 }
  0xb9   :  { %1011 = vmatprep.subr.bf16.mxu0 %v1880_v45 }
  0xbc   :  { %1012 = vmatpush1.bf16.msra.mxu0 %v1878_v47 }
  0xbd   :  { %1013 = vmatprep.subr.bf16.mxu0 %v1886_v48 }
  0xc0   :  { %1014 = vmatpush1.bf16.msra.mxu0 %v1884_v49 }
  0xc1   :  { %1015 = vmatprep.subr.bf16.mxu0 %v1892_v50 }
  0xc4   :  { %1016 = vmatpush1.bf16.msra.mxu0 %v1890_v51 }
  0xc5   :  { %1017 = vmatprep.subr.bf16.mxu0 %v1898_v46 }
  0xc8   :  { %1018 = vmatpush1.bf16.msra.mxu0 %v1896_v52 }
  0xc9   :  { %1019 = vmatprep.subr.bf16.mxu0 %v1904_v53 }
  0xcc   :  { %1020 = vmatpush1.bf16.msra.mxu0 %v1902_v54 }
  0xcd   :  { %1021 = vmatprep.subr.bf16.mxu0 %v1910_v55 }
  0xd0   :  { %1022 = vmatpush1.bf16.msra.mxu0 %v1908_v56 }
  0xd1   :  { %1023 = vmatprep.subr.bf16.mxu0 %v1916_v57 }
  0xd4   :  { %1024 = vmatpush1.bf16.msra.mxu0 %v1914_v58 }
  0xd5   :  { %1025 = vmatprep.subr.bf16.mxu0 %v1922_v59 }
  0xd8   :  { %1026 = vmatpush1.bf16.msra.mxu0 %v1920_v60 }
  0xd9   :  { %1027 = vmatprep.subr.bf16.mxu0 %v1928_v61 }
  0xdc   :  { %1028 = vmatpush1.bf16.msra.mxu0 %v1926_v62 }
  0xdd   :  { %1029 = vmatprep.subr.bf16.mxu0 %v1934_v63  ;;  %v1982_v63 = vld [vmem:[%s2271_s5] sm:$0xff]  }
  0xe0   :  { %1030 = vmatpush1.bf16.msra.mxu0 %v1932_v0 }
  0xe1   :  { %1031 = vmatprep.subr.bf16.mxu0 %v1940_v1  ;;  %v1983_v1 = vld [vmem:[%s2271_s5 + $0x8] sm:$0xff]  }
  0xe4   :  { %1032 = vmatpush1.bf16.msra.mxu0 %v1938_v2  ;;  %v1984_v2 = vld [vmem:[%s2271_s5 + $0x10] sm:$0xff]  }
  0xe5   :  { %1033 = vmatprep.subr.bf16.mxu0 %v1946_v3  ;;  %v1985_v3 = vld [vmem:[%s2271_s5 + $0x18] sm:$0xff]  }
  0xe8   :  { %1034 = vmatpush1.bf16.msra.mxu0 %v1944_v4  ;;  %v1986_v4 = vld [vmem:[%s2271_s5 + $0x20] sm:$0xff]  }
  0xe9   :  { %1035 = vmatprep.subr.bf16.mxu0 %v1952_v5  ;;  %v1987_v5 = vld [vmem:[%s2271_s5 + $0x28] sm:$0xff]  }
  0xec   :  { %1036 = vmatpush1.bf16.msra.mxu0 %v1950_v6  ;;  %v1988_v6 = vld [vmem:[%s2271_s5 + $0x30] sm:$0xff]  }
  0xed   :  { %1037 = vmatprep.subr.bf16.mxu0 %v1958_v7  ;;  %v1989_v7 = vld [vmem:[%s2271_s5 + $0x38] sm:$0xff]  }
  0xf0   :  { %1038 = vmatpush1.bf16.msra.mxu0 %v1956_v8 }
  0xf1   :  { %1039 = vmatprep.subr.bf16.mxu0 %v1963_v9  ;;  %v1628_v9 = vld [vmem:[%s2270_s4] ss:$0 sm:$0xff] }
  0xf4   :  { %1040 = vmatpush1.bf16.msra.mxu0 %v1961_v10 }
  0xf7   :  { %1042 = vmatmul.mubr.bf16.vlgmr.msra.gmra.mrb[0].mxu0 %v1496_v11 }
 0x153   :  { %v920_v29 = vpop.f32.mrb[0].mxu1 }
 0x154   :  { %v922_v30 = vpop.f32.mrb[1].mxu1  ;;  %v921_v40 = vadd.f32 %v920_v29, %v211_v38  ;;  %v1995_v29 = vld [vmem:[#allocation6 + $0x28] sm:$0xff]  }
 0x155   :  { %v924_v31 = vpop.f32.mrb[2].mxu1  ;;  %v923_v41 = vadd.f32 %v922_v30, %v215_v39  ;;  %v1996_v30 = vld [vmem:[#allocation6 + $0x30] sm:$0xff]  }
 0x156   :  { %v925_v32 = vpop.f32.mrb[3].mxu1  ;;  %v1997_v31 = vld [vmem:[#allocation6 + $0x38] sm:$0xff]  }
 0x157   :  { %v1646_v32 = vld [vmem:[%s2272_s6] ss:$0 sm:$0xff] }
 0x1ca   :  { %v1043_v42 = vpop.f32.mrb[0].mxu0 }
 0x1cb   :  { %v1746_v43 = vadd.f32 %v1043_v42, %v921_v40  ;;  %v1045_v44 = vpop.f32.mrb[1].mxu0 }
 0x1cc   :  { %v1748_v45 = vadd.f32 %v1045_v44, %v923_v41  ;;  %v1047_v47 = vpop.f32.mrb[2].mxu0 }
 0x1cd   :  { %v1050_v48 = vmin.f32 %v1746_v43, 0.0  ;;  %v1048_v49 = vpop.f32.mrb[3].mxu0  ;;  %v1062_v57 = vmul.f32 1.050701, %v1746_v43  ;;  %vm1060_vm0 = vcmp.gt.f32.partialorder %v1746_v43, 0.0 }
 0x1ce   :  { %v1051_v50 = vmin.f32 %v1748_v45, 0.0  ;;  %v1063_v58 = vmul.f32 1.050701, %v1748_v45  ;;  %vm1061_vm1 = vcmp.gt.f32.partialorder %v1748_v45, 0.0  ;;  %v1656_v45 = vld [vmem:[%s2274_s8] ss:$0 sm:$0xff] }
 0x1cf   :  { %v1052_v51 = vmul.f32 1.442695, %v1050_v48 }
 0x1d0   :  { %v1054_v46 = vmul.f32 1.442695, %v1051_v50 }
 0x1d1   :  { %1998 = vpow2.f32 %v1052_v51 }
 0x1d2   :  { %2000 = vpow2.f32 %v1054_v46 }
 0x1db   :  { %v1999_v52 = vpop.eup %1998 }
 0x1dc   :  { %v2001_v53 = vpop.eup %2000  ;;  %v1626_v54 = vadd.f32 -1.0, %v1999_v52 }
 0x1dd   :  { %v1627_v55 = vadd.f32 -1.0, %v2001_v53 }
 0x1de   :  { %v1058_v56 = vmul.f32 1.7580993, %v1626_v54 }
 0x1df   :  { %v1059_v59 = vmul.f32 1.7580993, %v1627_v55 }
 0x1e0   :  { %v1064_v60 = vsel %vm1060_vm0, %v1062_v57, %v1058_v56 }
 0x1e1   :  { %v1065_v61 = vsel %vm1061_vm1, %v1063_v58, %v1059_v59  ;;  %v1066_v0 = vpack.c.bf16 %v1064_v60, %v1064_v60 }
 0x1e2   :  { %v1067_v62 = vpack.c.bf16 %v1065_v61, %v1065_v61 }
 0x1e4   :  { %1235 = vmatprep.mubr.bf16.mxu1 %v1067_v62 }
 0x1e5   :  { %1236 = vmatmul.mubr.bf16.vlgmr.msra.gmra.mrb[4].mxu1 %v1066_v0 }
 0x1e6   :  { %1706 = vmatpush3.bf16.msra.mxu1 %v1982_v63  ;;  %1721 = vmatprep.mubr.msk.bf16.mxu1 %vm2084_vm2, %v2083_v28 }
 0x1e7   :  { %1707 = vmatprep.subr.bf16.mxu1 %v2083_v28 }
 0x1ea   :  { %1708 = vmatpush3.bf16.msra.mxu1 %v1983_v1 }
 0x1eb   :  { %1709 = vmatprep.subr.bf16.mxu1 %v2083_v28 }
 0x1ee   :  { %1710 = vmatpush3.bf16.msra.mxu1 %v1984_v2 }
 0x1ef   :  { %1711 = vmatprep.subr.bf16.mxu1 %v2083_v28 }
 0x1f2   :  { %1712 = vmatpush3.bf16.msra.mxu1 %v1985_v3 }
 0x1f3   :  { %1713 = vmatprep.subr.bf16.mxu1 %v2083_v28 }
 0x1f6   :  { %1714 = vmatpush3.bf16.msra.mxu1 %v1986_v4 }
 0x1f7   :  { %1715 = vmatprep.subr.bf16.mxu1 %v2083_v28 }
 0x1fa   :  { %1716 = vmatpush3.bf16.msra.mxu1 %v1987_v5 }
 0x1fb   :  { %1717 = vmatprep.subr.bf16.mxu1 %v2083_v28 }
 0x1fe   :  { %1718 = vmatpush3.bf16.msra.mxu1 %v1988_v6 }
 0x1ff   :  { %1719 = vmatprep.subr.bf16.mxu1 %v2083_v28 }
 0x202   :  { %1720 = vmatpush3.bf16.msra.mxu1 %v1989_v7 }
 0x203   :  { %1725 = vmatprep.subr.bf16.mxu1 %v2083_v28 }
 0x2b8   :  { %v1681_v8 = vpop.f32.mrb[4].mxu1 }
 0x2b9   :  { %v1682_v10 = vpop.f32.mrb[5].mxu1 }
 0x2ba   :  { %v1683_v11 = vadd.f32 %v1682_v10, %v1681_v8  ;;  %v1684_v12 = vpop.f32.mrb[6].mxu1 }
 0x2bb   :  { %v1685_v13 = vpop.f32.mrb[7].mxu1 }
 0x2bc   :  { %v1238_v14 = vadd.f32 %v1683_v11, %v1628_v9 }
 0x2be   :  { %v1243_v15 = vmin.f32 %v1238_v14, 0.0  ;;  %v1249_v20 = vmul.f32 1.050701, %v1238_v14  ;;  %vm1248_vm3 = vcmp.gt.f32.partialorder %v1238_v14, 0.0 }
 0x2c0   :  { %v1244_v16 = vmul.f32 1.442695, %v1243_v15 }
 0x2c2   :  { %2002 = vpow2.f32 %v1244_v16 }
 0x2cc   :  { %v2003_v17 = vpop.eup %2002 }
 0x2cd   :  { %v1645_v18 = vadd.f32 -1.0, %v2003_v17 }
 0x2cf   :  { %v1247_v19 = vmul.f32 1.7580993, %v1645_v18 }
 0x2d1   :  { %v1250_v21 = vsel %vm1248_vm3, %v1249_v20, %v1247_v19 }
 0x2d2   :  { %v1251_v23 = vpack.c.bf16 %v1250_v21, %v1250_v21 }
 0x2d4   :  { %1722 = vmatmul.mubr.bf16.vlgmr.msra.gmra.mrb[8].mxu1 %v1251_v23 }
 0x2d5   :  { %1726 = vmatpush3.bf16.msra.mxu1 %v1990_v22  ;;  %1741 = vmatprep.mubr.msk.bf16.mxu1 %vm2084_vm2, %v2083_v28 }
 0x2d6   :  { %1727 = vmatprep.subr.bf16.mxu1 %v2083_v28 }
 0x2d9   :  { %1728 = vmatpush3.bf16.msra.mxu1 %v1991_v24 }
 0x2da   :  { %1729 = vmatprep.subr.bf16.mxu1 %v2083_v28 }
 0x2dd   :  { %1730 = vmatpush3.bf16.msra.mxu1 %v1992_v25 }
 0x2de   :  { %1731 = vmatprep.subr.bf16.mxu1 %v2083_v28 }
 0x2e1   :  { %1732 = vmatpush3.bf16.msra.mxu1 %v1993_v26 }
 0x2e2   :  { %1733 = vmatprep.subr.bf16.mxu1 %v2083_v28 }
 0x2e5   :  { %1734 = vmatpush3.bf16.msra.mxu1 %v1994_v27 }
 0x2e6   :  { %1735 = vmatprep.subr.bf16.mxu1 %v2083_v28 }
 0x2e9   :  { %1736 = vmatpush3.bf16.msra.mxu1 %v1995_v29 }
 0x2ea   :  { %1737 = vmatprep.subr.bf16.mxu1 %v2083_v28 }
 0x2ed   :  { %1738 = vmatpush3.bf16.msra.mxu1 %v1996_v30 }
 0x2ee   :  { %1739 = vmatprep.subr.bf16.mxu1 %v2083_v28 }
 0x2f1   :  { %1740 = vmatpush3.bf16.msra.mxu1 %v1997_v31 }
 0x3a7   :  { %v1357_v33 = vpop.f32.mrb[8].mxu1 }
 0x3a8   :  { %v1358_v34 = vadd.f32 %v1646_v32, %v1357_v33  ;;  %v1723_v35 = vpop.f32.mrb[9].mxu1 }
 0x3a9   :  { %v1360_v36 = vpop.f32.mrb[10].mxu1 }
 0x3aa   :  { %v1363_v37 = vmin.f32 %v1358_v34, 0.0  ;;  %v1724_v38 = vpop.f32.mrb[11].mxu1  ;;  %v1369_v43 = vmul.f32 1.050701, %v1358_v34  ;;  %vm1368_vm4 = vcmp.gt.f32.partialorder %v1358_v34, 0.0 }
 0x3ac   :  { %v1364_v39 = vmul.f32 1.442695, %v1363_v37 }
 0x3ae   :  { %2004 = vpow2.f32 %v1364_v39 }
 0x3b8   :  { %v2005_v40 = vpop.eup %2004 }
 0x3b9   :  { %v1655_v41 = vadd.f32 -1.0, %v2005_v40 }
 0x3bb   :  { %v1367_v42 = vmul.f32 1.7580993, %v1655_v41 }
 0x3bd   :  { %v1370_v28 = vsel %vm1368_vm4, %v1369_v43, %v1367_v42 }
 0x3be   :  { %v1371_v44 = vpack.c.bf16 %v1370_v28, %v1370_v28 }
 0x3c0   :  { %1742 = vmatmul.mubr.bf16.vlgmr.msra.gmra.mrb[12].mxu1 %v1371_v44 }
 0x493   :  { %v1477_v47 = vpop.f32.mrb[12].mxu1 }
 0x494   :  { %v1478_v48 = vadd.f32 %v1656_v45, %v1477_v47  ;;  %v1743_v49 = vpop.f32.mrb[13].mxu1 }
 0x495   :  { %v1480_v50 = vpop.f32.mrb[14].mxu1 }
 0x496   :  { %1483 = vst [vmem:[%s2275_s9] sm:$0xff] %v1478_v48  ;;  %v1744_v51 = vpop.f32.mrb[15].mxu1 }
 0x497   :  { %1488 = vsyncpa [#allocation3], 1 }
 0x498   :  { %1489 = vsyncpa [#allocation5], 1 }

</bundles_post_ra>
